<compile_context>
chip_gen: v6e
topology: v6e:2x2x1
jax: 0.10.0
libtpu: 0.0.40
codegen_flags: <defaults>
</compile_context>

<pallas_src>
import functools

import jax
import jax.numpy as jnp
from jax.experimental import pallas as pl
from jax.experimental.pallas import tpu as pltpu

_LANES = 128


def _dls_kernel(dist_ref, alpha_ref, beta_ref, out_ref, smoothed_ref, *, epsilon):
    # rational(x) = alpha / (beta * x + eps), vectorized over lanes.
    # pl.reciprocal(approx=True) uses the EUP slot, which is otherwise idle in
    # this purely elementwise kernel (no-cost on v6e/v7x, harmless on v5e).
    denom = beta_ref[...] * dist_ref[...] + epsilon
    smoothed = alpha_ref[...] * pl.reciprocal(denom, approx=True)
    smoothed_ref[...] = smoothed
    # Module's forward return: abs(org - labels) where `org` aliases the fully
    # mutated `labels`.  Register-resident, no extra memory traffic, and it
    # preserves the inf -> nan propagation of the PyTorch aliasing bug.
    out_ref[...] = jnp.abs(smoothed - smoothed)


def _pick_row_tile(num_rows, num_lanes, itemsize):
    """Row-tile size: ~1 MiB per streamed array per tile, multiple of 8.

    Double-buffered working set = 2 bufs * (1 input + 2 outputs) * tile
    <= ~6 MiB, well inside the default scoped-VMEM limit on v5e/v6e and on
    v7x (32 MiB scoped / 64 MiB physical)."""
    target_bytes = 1 << 20
    tile = max(8, (target_bytes // (num_lanes * itemsize)) // 8 * 8)
    if num_rows <= tile:
        return num_rows          # full-extent block is always layout-legal
    return tile                  # multiple of 8; ragged final block is masked


def _smooth_rows(dist2, alpha_row, beta_row, epsilon):
    """dist2: [R, L]; alpha_row/beta_row: [1, L]. Returns (forward, smoothed)."""
    R, L = dist2.shape
    TR = _pick_row_tile(R, L, dist2.dtype.itemsize)
    kernel = functools.partial(_dls_kernel, epsilon=epsilon)
    return pl.pallas_call(
        kernel,
        out_shape=(
            jax.ShapeDtypeStruct((R, L), dist2.dtype),   # forward result
            jax.ShapeDtypeStruct((R, L), dist2.dtype),   # smoothed labels
        ),
        grid=(pl.cdiv(R, TR),),
        in_specs=[
            pl.BlockSpec((TR, L), lambda i: (i, 0)),     # distances tile
            pl.BlockSpec((1, L), lambda i: (0, 0)),      # alpha (broadcast row)
            pl.BlockSpec((1, L), lambda i: (0, 0)),      # beta  (broadcast row)
        ],
        out_specs=(
            pl.BlockSpec((TR, L), lambda i: (i, 0)),
            pl.BlockSpec((TR, L), lambda i: (i, 0)),
        ),
        compiler_params=pltpu.CompilerParams(
            # Independent row tiles -> parallel: lets v7x shard the mem-bound
            # stream across both TensorCores (no-op on v5e/v6e).
            dimension_semantics=("parallel",),
        ),
    )(dist2, alpha_row, beta_row)


def distance_label_smoothing(labels, distances, alpha, beta, epsilon=1e-6):
    """Functional DistanceLabelSmothing.forward.

    Returns (forward_out, updated_labels):
      forward_out    -- what the PyTorch module returns (abs(org - labels)).
      updated_labels -- the values the input `labels` tensor holds after the
                        in-place loop (materialized side effect).
    `labels` is never read: every column is overwritten before the aliased
    subtraction, so streaming it from HBM would be pure waste.
    """
    B, C = distances.shape
    dtype = distances.dtype
    del labels  # dead input (see docstring); HBM traffic = 1 read + 2 writes
    alpha_row = alpha.astype(dtype).reshape(1, C)
    beta_row = beta.astype(dtype).reshape(1, C)

    if C < _LANES and _LANES % C == 0 and B % (_LANES // C) == 0:
        # Lane-dense layout: pack g = 128 // C consecutive batch rows into one
        # 128-lane row (row-major flatten, no data reorder); alpha/beta are
        # lane-tiled to match.  Avoids masked stores at 12.5% lane utilization.
        g = _LANES // C
        dist2 = distances.reshape(B // g, _LANES)
        a2 = jnp.tile(alpha_row, (1, g))
        b2 = jnp.tile(beta_row, (1, g))
        out2, sm2 = _smooth_rows(dist2, a2, b2, epsilon)
        return out2.reshape(B, C), sm2.reshape(B, C)

    # Natural [B, C] layout (C already lane-friendly, or not evenly packable).
    return _smooth_rows(distances, alpha_row, beta_row, epsilon)


if __name__ == "__main__":
    num_classes = 16
    batch = 8
    alpha_init = 0.1
    beta_init = 0.1
    epsilon = 1e-6

    key = jax.random.PRNGKey(0)
    k1, k2 = jax.random.split(key)
    labels = jax.random.uniform(k1, (batch, num_classes), dtype=jnp.float32)
    # distances: positive values, like a distance map
    distances = jax.random.uniform(
        k2, (batch, num_classes), dtype=jnp.float32, minval=0.1, maxval=5.0
    )

    # Deterministic parameter init, matching nn.Parameter(torch.tensor([alpha])) per class.
    alpha = jnp.full((num_classes,), alpha_init, dtype=jnp.float32)
    beta = jnp.full((num_classes,), beta_init, dtype=jnp.float32)

    out, new_labels = distance_label_smoothing(labels, distances, alpha, beta, epsilon)
    out, new_labels = jax.block_until_ready((out, new_labels))

    # Pure-JAX reference mirroring the PyTorch forward (including the aliasing bug).
    smoothed_ref = alpha[None, :] / (beta[None, :] * distances + epsilon)
    fwd_ref = jnp.abs(smoothed_ref - smoothed_ref)   # all zeros for finite values

    assert out.shape == (batch, num_classes)
    assert out.dtype == jnp.float32
    assert bool(jnp.array_equal(out, fwd_ref)), "forward output mismatch vs reference"
    assert bool(jnp.allclose(new_labels, smoothed_ref, rtol=1e-2, atol=1e-5)), (
        "smoothed labels (in-place side effect) mismatch vs reference"
    )

    print("KERNEL_OK")
</pallas_src>

<mosaic_0001>
module attributes {stable_mosaic.version = 11 : i64} {
  func.func @_dls_kernel(%arg0: i32, %arg1: memref<1x128xf32, #tpu.memory_space<vmem>>, %arg2: memref<1x128xf32, #tpu.memory_space<vmem>>, %arg3: memref<1x128xf32, #tpu.memory_space<vmem>>, %arg4: memref<1x128xf32, #tpu.memory_space<vmem>>, %arg5: memref<1x128xf32, #tpu.memory_space<vmem>>) attributes {dimension_semantics = [#tpu.dimension_semantics<parallel>], iteration_bounds = array<i64: 1>, scalar_prefetch = 0 : i64, scratch_operands = 0 : i64, tpu.core_type = #tpu.core_type<tc>, window_params = [{transform_indices = @transform_0, window_bounds = array<i64: 1, 128>}, {pipeline_mode = #tpu.pipeline_mode<synchronous>, transform_indices = @transform_1, window_bounds = array<i64: 1, 128>}, {pipeline_mode = #tpu.pipeline_mode<synchronous>, transform_indices = @transform_2, window_bounds = array<i64: 1, 128>}, {transform_indices = @transform_3, window_bounds = array<i64: 1, 128>}, {transform_indices = @transform_4, window_bounds = array<i64: 1, 128>}]} {
    %c0 = arith.constant 0 : index
    %c0_0 = arith.constant 0 : index
    %0 = vector.load %arg3[%c0, %c0_0] : memref<1x128xf32, #tpu.memory_space<vmem>>, vector<1x128xf32>
    %c0_1 = arith.constant 0 : index
    %c0_2 = arith.constant 0 : index
    %1 = vector.load %arg1[%c0_1, %c0_2] : memref<1x128xf32, #tpu.memory_space<vmem>>, vector<1x128xf32>
    %2 = arith.mulf %0, %1 : vector<1x128xf32>
    %cst = arith.constant 9.99999997E-7 : f32
    %3 = vector.broadcast %cst : f32 to vector<1x128xf32>
    %4 = arith.addf %2, %3 : vector<1x128xf32>
    %c0_3 = arith.constant 0 : index
    %c0_4 = arith.constant 0 : index
    %5 = vector.load %arg2[%c0_3, %c0_4] : memref<1x128xf32, #tpu.memory_space<vmem>>, vector<1x128xf32>
    %6 = tpu.reciprocal %4 {approx = true} : vector<1x128xf32> -> vector<1x128xf32>
    %7 = arith.mulf %5, %6 : vector<1x128xf32>
    %c0_5 = arith.constant 0 : index
    %c0_6 = arith.constant 0 : index
    %8 = vector.load %arg5[%c0_5, %c0_6] : memref<1x128xf32, #tpu.memory_space<vmem>>, vector<1x128xf32>
    tpu.vector_store %arg5[%c0_5, %c0_6], %7 {strides = array<i32>} : memref<1x128xf32, #tpu.memory_space<vmem>>, vector<1x128xf32>,
    %9 = arith.subf %7, %7 : vector<1x128xf32>
    %10 = math.absf %9 : vector<1x128xf32>
    %c0_7 = arith.constant 0 : index
    %c0_8 = arith.constant 0 : index
    %11 = vector.load %arg4[%c0_7, %c0_8] : memref<1x128xf32, #tpu.memory_space<vmem>>, vector<1x128xf32>
    tpu.vector_store %arg4[%c0_7, %c0_8], %10 {strides = array<i32>} : memref<1x128xf32, #tpu.memory_space<vmem>>, vector<1x128xf32>,
    return
  }
  func.func @transform_0(%arg0: i32) -> (i32, i32) {
    %c0_i32 = arith.constant 0 : i32
    %c0_i32_0 = arith.constant 0 : i32
    return %arg0, %c0_i32 : i32, i32
  }
  func.func @transform_1(%arg0: i32) -> (i32, i32) {
    %c0_i32 = arith.constant 0 : i32
    %c0_i32_0 = arith.constant 0 : i32
    %c0_i32_1 = arith.constant 0 : i32
    return %c0_i32, %c0_i32_0 : i32, i32
  }
  func.func @transform_2(%arg0: i32) -> (i32, i32) {
    %c0_i32 = arith.constant 0 : i32
    %c0_i32_0 = arith.constant 0 : i32
    %c0_i32_1 = arith.constant 0 : i32
    return %c0_i32, %c0_i32_0 : i32, i32
  }
  func.func @transform_3(%arg0: i32) -> (i32, i32) {
    %c0_i32 = arith.constant 0 : i32
    %c0_i32_0 = arith.constant 0 : i32
    return %arg0, %c0_i32 : i32, i32
  }
  func.func @transform_4(%arg0: i32) -> (i32, i32) {
    %c0_i32 = arith.constant 0 : i32
    %c0_i32_0 = arith.constant 0 : i32
    return %arg0, %c0_i32 : i32, i32
  }
}

</mosaic_0001>

<bundles_post_ra>
// kernel: tpu_custom_call.1
= control target key start
LH: loop header
LB: loop body
LE: loop exit
PB: predicated region body
PF: predicated region fallthrough
CT: control target
= control target key end

     0   :  { %10 = vsyncpa [#allocation3], 0  ;;  %s184_s0 = inlined_call_operand.hbm [shape: f32[1,128], index: 0, kind: input, shape index: {}]   ;;  %s185_s1 = inlined_call_operand.vmem [shape: f32[1,128], index: 1, kind: input, shape index: {}]   ;;  %s186_s2 = inlined_call_operand.vmem [shape: f32[1,128], index: 2, kind: input, shape index: {}]   ;;  %s187_s3 = inlined_call_operand.hbm [shape: f32[1,128], index: 3, kind: output, shape index: {0}]   ;;  %s188_s4 = inlined_call_operand.hbm [shape: f32[1,128], index: 4, kind: output, shape index: {1}]  }
   0x1   :  { %11 = vsyncpa [#allocation4], 0 }
   0x2   :  { %12 = vsyncpa [#allocation7], 0  ;;  %s141_s15 = smov [#allocation2]  }
   0x3   :  { %s19_s16 = sshll.u32 %s141_s15, 4  ;;  %s20_s16 = int_to_ptr.vmem [resolvable:$true] %s19_s16 }
   0x4   :  { %s83_s17 = scalar_lea.vmem %s20_s16, 16  ;;  %s87_s18 = scalar_lea.vmem %s20_s16, 32 }
   0x5   :  { %p84_p0 = scmp.ne.s32.totalorder %s20_s16, %s83_s17  ;;  %p88_p1 = scmp.lt.s32.totalorder %s20_s16, %s20_s16 }
   0x6   :  { %p89_p2 = scmp.lt.s32.totalorder %s87_s18, %s83_s17 }
   0x8   :  { %p90_p3 = por %p89_p2, %p88_p1 }
   0xa   :  { %p91_p4 = pnand %p90_p3, %p84_p0 }
   0xc   :  { %94 = shalt.err (!%p91_p4)
}
   0xd   :  { %22 = dma.hbm_to_vmem [thread:$0]  %s184_s0, 16, %s20_s16, [#allocation3]  }
   0xe   :  { %135 = dma.done.wait [#allocation3], 16  }
   0xf   :  { %136 = vsyncadd [#allocation3], 4294967280  ;;  %v30_v0 = vld [vmem:[%s186_s2] sm:$0x1]  ;;  %s142_s25 = smov [#allocation6]   ;;  %s143_s0 = smov [#allocation5]  }
  0x10   :  { %v31_v1 = vld [vmem:[#allocation2] sm:$0x1]  ;;  %s57_s26 = sshll.u32 %s142_s25, 4  ;;  %s47_s27 = sshll.u32 %s143_s0, 4  ;;  %s58_s26 = int_to_ptr.vmem [resolvable:$true] %s57_s26  ;;  %s48_s27 = int_to_ptr.vmem [resolvable:$true] %s47_s27 }
  0x11   :  { %v32_v2 = vmul.f32 %v31_v1, %v30_v0  ;;  %v34_v4 = vld [vmem:[%s185_s1] sm:$0x1]  ;;  %s95_s28 = scalar_lea.vmem %s58_s26, 16  ;;  %s99_s2 = scalar_lea.vmem %s58_s26, 32 }
  0x12   :  { %p96_p5 = scmp.ne.s32.totalorder %s58_s26, %s95_s28  ;;  %p100_p6 = scmp.lt.s32.totalorder %s58_s26, %s58_s26 }
  0x13   :  { %v33_v3 = vadd.f32 1e-06, %v32_v2  ;;  %p101_p7 = scmp.lt.s32.totalorder %s99_s2, %s95_s28 }
  0x15   :  { %73 = vrcp.f32 %v33_v3  ;;  %p102_p8 = por %p101_p7, %p100_p6 }
  0x17   :  { %p103_p9 = pnand %p102_p8, %p96_p5 }
  0x22   :  { %v74_v5 = vpop.eup %73 }
  0x23   :  { %v36_v6 = vmul.f32 %v74_v5, %v34_v4 }
  0x25   :  { %37 = vst [vmem:[#allocation6] sm:$0x1] %v36_v6  ;;  %v38_v7 = vsub.f32 %v36_v6, %v36_v6 }
  0x26   :  { %106 = shalt.err (!%p103_p9)
}
  0x27   :  { %60 = dma.vmem_to_hbm [thread:$0]  %s58_s26, 16, %s188_s4, [#allocation7]   ;;  %v39_v8 = vand.u32 2147483647, %v38_v7 }
  0x28   :  { %s115_s1 = scalar_lea.vmem %s48_s27, 16  ;;  %s119_s5 = scalar_lea.vmem %s48_s27, 32 }
  0x29   :  { %40 = vst [vmem:[#allocation5] sm:$0x1] %v39_v8  ;;  %p116_p10 = scmp.ne.s32.totalorder %s48_s27, %s115_s1  ;;  %p120_p11 = scmp.lt.s32.totalorder %s48_s27, %s48_s27 }
  0x2a   :  { %p121_p12 = scmp.lt.s32.totalorder %s119_s5, %s115_s1 }
  0x2c   :  { %p122_p13 = por %p121_p12, %p120_p11 }
  0x2e   :  { %p123_p0 = pnand %p122_p13, %p116_p10 }
  0x30   :  { %126 = shalt.err (!%p123_p0)
}
  0x31   :  { %50 = dma.vmem_to_hbm [thread:$0]  %s48_s27, 16, %s187_s3, [#allocation4]  }
  0x32   :  { %137 = dma.done.wait [#allocation4], 16  }
  0x33   :  { %138 = vsyncadd [#allocation4], 4294967280 }
  0x34   :  { %139 = dma.done.wait [#allocation7], 16  }
  0x35   :  { %140 = vsyncadd [#allocation7], 4294967280 }
  0x36   :  { %67 = vsyncpa [#allocation3], 1 }
  0x37   :  { %68 = vsyncpa [#allocation4], 1 }
  0x38   :  { %69 = vsyncpa [#allocation7], 1 }

</bundles_post_ra>
